<compile_context>
chip_gen: v5e
topology: v5e:2x2
jax: 0.10.0
libtpu: 0.0.40
codegen_flags: <defaults>
</compile_context>

<pallas_src>
import functools

import jax
import jax.numpy as jnp
from jax import lax
from jax.experimental import pallas as pl
from jax.experimental.pallas import tpu as pltpu


# ----------------------------------------------------------------------------
# Generation-aware budgets.
# ----------------------------------------------------------------------------
def _hw_budgets():
    """Returns (per-block byte cap, scoped-VMEM limit, fused-path tensor cap)."""
    cap = 0
    try:
        info = pltpu.get_tpu_info()
        for name in ("vmem_capacity_bytes", "vmem_bytes", "vmem_size_bytes"):
            v = getattr(info, name, None)
            if v:
                cap = int(v)
                break
    except Exception:
        cap = 0
    if cap >= 100 * 1024 * 1024:          # v5e / v6e: 128 MiB physical VMEM
        block_cap = 6 * 1024 * 1024
        vmem_limit = 64 * 1024 * 1024
    else:                                 # v7x (64 MiB / TC) or unknown: conservative
        block_cap = 3 * 1024 * 1024
        vmem_limit = 32 * 1024 * 1024
    fused_cap = vmem_limit // 5           # whole-tensor-resident single-pass threshold
    return block_cap, vmem_limit, fused_cap


def _pick_tile_hw(hw, c, block_bytes_cap):
    """Largest lane-dense HW tile keeping a (1, C, tile) f32 block under the cap.

    Searches all multiples of 128; prefers exact divisors of HW, otherwise the
    candidate minimizing the padded tail (prefer larger tiles on ties).
    """
    max_tile = max(128, ((block_bytes_cap // 4) // max(c, 1)) // 128 * 128)
    if hw <= max_tile:
        return hw                          # whole row per block (block == full dim)
    # Prefer the largest exact divisor that is a multiple of 128.
    for cand in range(max_tile, 127, -128):
        if hw % cand == 0:
            return cand
    # Otherwise minimize the fraction of padded/wasted work in the last tile.
    best_key, best_t = None, 128
    for cand in range(max_tile, 127, -128):
        n = -(-hw // cand)
        waste_frac = (n * cand - hw) / float(n * cand)
        key = (waste_frac, -cand)          # smaller waste first, then bigger tile
        if best_key is None or key < best_key:
            best_key, best_t = key, cand
    return best_t


# ----------------------------------------------------------------------------
# Fused single-pass kernel (whole tensor resident in VMEM).
# ----------------------------------------------------------------------------
def _fused_kernel(x_ref, gamma_ref, beta_ref, o_ref, delta_ref, *, h_lvl, eps):
    x = x_ref[...]                                       # (N, C, HW) f32
    mean = jnp.mean(x, axis=2, keepdims=True)            # (N, C, 1)
    mean = jnp.mean(mean, axis=0, keepdims=True)         # (1, C, 1)
    sq = jnp.square(x - mean)
    var = jnp.mean(sq, axis=2, keepdims=True)
    var = jnp.mean(var, axis=0, keepdims=True)           # (1, C, 1) biased
    y = (x - mean) * lax.rsqrt(var + eps) * gamma_ref[...] + beta_ref[...]

    am = jnp.max(jnp.abs(y), axis=2, keepdims=True)      # (N, C, 1)
    am = jnp.max(am, axis=0, keepdims=True)              # (1, C, 1)
    am = jnp.max(am, axis=1, keepdims=True)              # (1, 1, 1)
    delta = am / h_lvl
    bound = h_lvl * delta
    y = jnp.clip(y, -bound, bound)                       # hardtanh
    o_ref[...] = jnp.round(y / delta) * delta            # quantize
    delta_ref[...] = delta.reshape(1, 1)


# ----------------------------------------------------------------------------
# Pass 1: per-channel sum / sumsq / min / max over HW, blocked per batch index.
# ----------------------------------------------------------------------------
def _stats_kernel(x_ref, sum_ref, sumsq_ref, min_ref, max_ref,
                  *, tile_hw, hw_total, ragged):
    t = pl.program_id(1)

    @pl.when(t == 0)
    def _():
        sum_ref[...] = jnp.zeros(sum_ref.shape, sum_ref.dtype)
        sumsq_ref[...] = jnp.zeros(sumsq_ref.shape, sumsq_ref.dtype)
        min_ref[...] = jnp.full(min_ref.shape, jnp.inf, min_ref.dtype)
        max_ref[...] = jnp.full(max_ref.shape, -jnp.inf, max_ref.dtype)

    xt = x_ref[0]                                        # (C, tile_hw) f32

    def accumulate(xs, xmn, xmx):
        sum_ref[0] += jnp.sum(xs, axis=1, keepdims=True)
        sumsq_ref[0] += jnp.sum(xs * xs, axis=1, keepdims=True)
        min_ref[0] = jnp.minimum(min_ref[0], jnp.min(xmn, axis=1, keepdims=True))
        max_ref[0] = jnp.maximum(max_ref[0], jnp.max(xmx, axis=1, keepdims=True))

    if not ragged:
        accumulate(xt, xt, xt)
    else:
        last = pl.num_programs(1) - 1

        @pl.when(t < last)                               # full tiles: unmasked fast path
        def _():
            accumulate(xt, xt, xt)

        @pl.when(t == last)                              # only the ragged tail is masked
        def _():
            lane = lax.broadcasted_iota(jnp.int32, xt.shape, 1)
            valid = (t * tile_hw + lane) < hw_total
            accumulate(jnp.where(valid, xt, 0.0),
                       jnp.where(valid, xt, jnp.inf),
                       jnp.where(valid, xt, -jnp.inf))


# ----------------------------------------------------------------------------
# Pass 2: folded BN affine + hardtanh + uniform quantization.
# ----------------------------------------------------------------------------
def _quantize_kernel(scalars_ref, x_ref, scale_ref, shift_ref, o_ref):
    # scalars_ref (scalar-prefetch / SMEM): [delta, inv_delta, bound]
    x = x_ref[0]                                         # (C, tile_hw) f32
    y = x * scale_ref[...] + shift_ref[...]              # per-channel BN affine
    bound = scalars_ref[2]
    y = jnp.clip(y, -bound, bound)                       # hardtanh
    o_ref[0] = jnp.round(y * scalars_ref[1]) * scalars_ref[0]


def qbn2d_forward(x_nchw, gamma, beta, *, qbit=4, eps=1e-5,
                  force_tiled=False, tile_hw_override=None):
    """Training-mode QBN2d forward.  Returns (y_nchw, delta_x)."""
    N, C, H, W = x_nchw.shape
    h_lvl = float(2 ** (qbit - 1) - 1)
    HW = H * W

    x3 = x_nchw.reshape(N, C, HW).astype(jnp.float32)    # free reshape, no transpose
    gamma = gamma.astype(jnp.float32)
    beta = beta.astype(jnp.float32)

    block_cap, vmem_limit, fused_cap = _hw_budgets()
    x_bytes = N * C * HW * 4

    # ------------------ fused single-pass path (x read once) ----------------
    if (not force_tiled) and x_bytes <= fused_cap:
        fused = functools.partial(_fused_kernel, h_lvl=h_lvl, eps=eps)
        y3, delta11 = pl.pallas_call(
            fused,
            out_shape=(jax.ShapeDtypeStruct((N, C, HW), jnp.float32),
                       jax.ShapeDtypeStruct((1, 1), jnp.float32)),
            compiler_params=pltpu.CompilerParams(vmem_limit_bytes=vmem_limit),
            cost_estimate=pl.CostEstimate(
                flops=int(12 * N * C * HW), transcendentals=int(C),
                bytes_accessed=int(2 * x_bytes)),
        )(x3, gamma.reshape(1, C, 1), beta.reshape(1, C, 1))
        return y3.reshape(N, C, H, W), delta11[0, 0]

    # ---------------------------- tiled two-pass path -----------------------
    tile_hw = (tile_hw_override if tile_hw_override is not None
               else _pick_tile_hw(HW, C, block_cap))
    n_hw = pl.cdiv(HW, tile_hw)
    ragged = (HW % tile_hw) != 0

    # -------------------- pass 1: per-channel statistics --------------------
    stats_kernel = functools.partial(
        _stats_kernel, tile_hw=tile_hw, hw_total=HW, ragged=ragged)
    csum, csumsq, cmin, cmax = pl.pallas_call(
        stats_kernel,
        grid=(N, n_hw),
        in_specs=[pl.BlockSpec((1, C, tile_hw), lambda n, t: (n, 0, t))],
        out_specs=tuple(pl.BlockSpec((1, C, 1), lambda n, t: (n, 0, 0))
                        for _ in range(4)),
        out_shape=tuple(jax.ShapeDtypeStruct((N, C, 1), jnp.float32)
                        for _ in range(4)),
        compiler_params=pltpu.CompilerParams(
            dimension_semantics=("parallel", "arbitrary"),   # N-parallel -> v7x megacore
            vmem_limit_bytes=vmem_limit),
        cost_estimate=pl.CostEstimate(
            flops=int(5 * N * C * HW), transcendentals=0,
            bytes_accessed=int(x_bytes + 16 * N * C)),
    )(x3)

    # ---------------- tiny O(C) scalar math (plain JAX/XLA) -----------------
    count = jnp.float32(N * HW)
    sum_c = jnp.sum(csum[:, :, 0], axis=0)                # reduce over N (tiny)
    sumsq_c = jnp.sum(csumsq[:, :, 0], axis=0)
    min_c = jnp.min(cmin[:, :, 0], axis=0)
    max_c = jnp.max(cmax[:, :, 0], axis=0)

    mean = sum_c / count
    var = jnp.maximum(sumsq_c / count - mean * mean, 0.0)  # biased, clamped
    inv_std = lax.rsqrt(var + eps)
    scale = gamma * inv_std                                 # (C,)
    shift = beta - mean * scale                             # (C,)

    # max|y| from per-channel extremes of x (y is affine & monotone in x).
    y_lo = min_c * scale + shift
    y_hi = max_c * scale + shift
    abs_max = jnp.max(jnp.maximum(jnp.abs(y_lo), jnp.abs(y_hi)))
    delta = abs_max / h_lvl
    inv_delta = 1.0 / delta             # exact scalar reciprocal (computed once)
    bound = h_lvl * delta
    scalars = jnp.stack([delta, inv_delta, bound]).astype(jnp.float32)

    # -------------------- pass 2: normalize / clip / quantize ---------------
    out3 = pl.pallas_call(
        _quantize_kernel,
        out_shape=jax.ShapeDtypeStruct((N, C, HW), jnp.float32),
        grid_spec=pltpu.PrefetchScalarGridSpec(
            num_scalar_prefetch=1,
            grid=(N, n_hw),
            in_specs=[
                pl.BlockSpec((1, C, tile_hw), lambda n, t, sc: (n, 0, t)),
                pl.BlockSpec((C, 1), lambda n, t, sc: (0, 0)),  # resident params
                pl.BlockSpec((C, 1), lambda n, t, sc: (0, 0)),
            ],
            out_specs=pl.BlockSpec((1, C, tile_hw), lambda n, t, sc: (n, 0, t)),
        ),
        compiler_params=pltpu.CompilerParams(
            dimension_semantics=("parallel", "parallel"),
            vmem_limit_bytes=vmem_limit),
        cost_estimate=pl.CostEstimate(
            flops=int(6 * N * C * HW), transcendentals=0,
            bytes_accessed=int(2 * x_bytes + 8 * C)),
    )(scalars, x3, scale.reshape(C, 1), shift.reshape(C, 1))

    return out3.reshape(N, C, H, W), delta


def qbn2d_reference(x_nchw, gamma, beta, *, qbit=4, eps=1e-5):
    """Pure-JAX reference for correctness check."""
    h_lvl = 2 ** (qbit - 1) - 1
    x = x_nchw.astype(jnp.float32)
    mean = jnp.mean(x, axis=(0, 2, 3), keepdims=True)
    var = jnp.mean((x - mean) ** 2, axis=(0, 2, 3), keepdims=True)
    y = (x - mean) * lax.rsqrt(var + eps)
    y = y * gamma.reshape(1, -1, 1, 1) + beta.reshape(1, -1, 1, 1)
    delta = jnp.max(jnp.abs(y)) / h_lvl
    y = jnp.clip(y, -h_lvl * delta, h_lvl * delta)
    return jnp.round(y / delta) * delta, delta


def _check(y, d, y_ref, d_ref, name, tol=1e-3):
    assert jnp.allclose(d, d_ref, atol=1e-6, rtol=1e-5), f"{name}: delta mismatch"
    diff = jnp.abs(y - y_ref)
    # Values that land (to within float associativity error) exactly on a
    # rounding boundary may legitimately end up one quantization level apart
    # between the fused kernel and the reference; everything else must match.
    tight = diff <= tol
    one_level = jnp.abs(diff - d_ref) <= tol
    assert bool(jnp.all(jnp.logical_or(tight, one_level))), f"{name}: output mismatch"
    assert float(jnp.mean(tight.astype(jnp.float32))) > 0.995, f"{name}: too many level flips"


if __name__ == "__main__":
    key = jax.random.PRNGKey(0)
    kx, kg, kb, kx2 = jax.random.split(key, 4)

    qbit = 4

    # Case 1: small tensor -> fused single-pass path; also force the tiled path.
    N, C, H, W = 2, 4, 16, 16
    x = jax.random.normal(kx, (N, C, H, W), dtype=jnp.float32)
    gamma = 1.0 + 0.1 * jax.random.normal(kg, (C,), dtype=jnp.float32)
    beta = 0.1 * jax.random.normal(kb, (C,), dtype=jnp.float32)

    y_ref, d_ref = qbn2d_reference(x, gamma, beta, qbit=qbit)

    y1, d1 = qbn2d_forward(x, gamma, beta, qbit=qbit)
    y1 = jax.block_until_ready(y1)
    d1 = jax.block_until_ready(d1)
    _check(y1, d1, y_ref, d_ref, "fused")

    y2, d2 = qbn2d_forward(x, gamma, beta, qbit=qbit, force_tiled=True)
    y2 = jax.block_until_ready(y2)
    _check(y2, d2, y_ref, d_ref, "tiled")

    # Case 2: odd spatial size + small tile override -> exercises multi-tile
    # accumulation and the ragged last-tile masking in the tiled path.
    N2, C2, H2, W2 = 2, 3, 14, 14
    x2 = jax.random.normal(kx2, (N2, C2, H2, W2), dtype=jnp.float32)
    g2 = jnp.full((C2,), 1.2, jnp.float32)
    b2 = jnp.full((C2,), -0.05, jnp.float32)
    y_ref2, d_ref2 = qbn2d_reference(x2, g2, b2, qbit=qbit)

    y3, d3 = qbn2d_forward(x2, g2, b2, qbit=qbit, force_tiled=True,
                           tile_hw_override=128)
    y3 = jax.block_until_ready(y3)
    _check(y3, d3, y_ref2, d_ref2, "tiled-ragged")

    print("KERNEL_OK")
</pallas_src>

<mosaic_0001>
module attributes {stable_mosaic.version = 11 : i64} {
  func.func @_fused_kernel(%arg0: memref<2x4x256xf32, #tpu.memory_space<vmem>>, %arg1: memref<1x4x1xf32, #tpu.memory_space<vmem>>, %arg2: memref<1x4x1xf32, #tpu.memory_space<vmem>>, %arg3: memref<2x4x256xf32, #tpu.memory_space<vmem>>, %arg4: memref<1x1xf32, #tpu.memory_space<vmem>>) attributes {dimension_semantics = [], scalar_prefetch = 0 : i64, scratch_operands = 0 : i64, tpu.core_type = #tpu.core_type<tc>} {
    %c0 = arith.constant 0 : index
    %c0_0 = arith.constant 0 : index
    %c0_1 = arith.constant 0 : index
    %0 = vector.load %arg0[%c0, %c0_0, %c0_1] : memref<2x4x256xf32, #tpu.memory_space<vmem>>, vector<2x4x256xf32>
    %cst = arith.constant dense<0.000000e+00> : vector<2x4xf32>
    %1 = vector.multi_reduction <add>, %0, %cst [2] : vector<2x4x256xf32> to vector<2x4xf32>
    %2 = vector.shape_cast %1 : vector<2x4xf32> to vector<2x4x1xf32>
    %cst_2 = arith.constant 2.560000e+02 : f32
    %3 = vector.broadcast %cst_2 : f32 to vector<2x4x1xf32>
    %4 = arith.divf %2, %3 : vector<2x4x1xf32>
    %cst_3 = arith.constant dense<0.000000e+00> : vector<4x1xf32>
    %5 = vector.multi_reduction <add>, %4, %cst_3 [0] : vector<2x4x1xf32> to vector<4x1xf32>
    %6 = vector.shape_cast %5 : vector<4x1xf32> to vector<1x4x1xf32>
    %cst_4 = arith.constant 2.000000e+00 : f32
    %7 = vector.broadcast %cst_4 : f32 to vector<1x4x1xf32>
    %8 = arith.divf %6, %7 : vector<1x4x1xf32>
    %9 = vector.broadcast %8 : vector<1x4x1xf32> to vector<2x4x256xf32>
    %10 = arith.subf %0, %9 : vector<2x4x256xf32>
    %11 = arith.mulf %10, %10 : vector<2x4x256xf32>
    %cst_5 = arith.constant dense<0.000000e+00> : vector<2x4xf32>
    %12 = vector.multi_reduction <add>, %11, %cst_5 [2] : vector<2x4x256xf32> to vector<2x4xf32>
    %13 = vector.shape_cast %12 : vector<2x4xf32> to vector<2x4x1xf32>
    %cst_6 = arith.constant 2.560000e+02 : f32
    %14 = vector.broadcast %cst_6 : f32 to vector<2x4x1xf32>
    %15 = arith.divf %13, %14 : vector<2x4x1xf32>
    %cst_7 = arith.constant dense<0.000000e+00> : vector<4x1xf32>
    %16 = vector.multi_reduction <add>, %15, %cst_7 [0] : vector<2x4x1xf32> to vector<4x1xf32>
    %17 = vector.shape_cast %16 : vector<4x1xf32> to vector<1x4x1xf32>
    %cst_8 = arith.constant 2.000000e+00 : f32
    %18 = vector.broadcast %cst_8 : f32 to vector<1x4x1xf32>
    %19 = arith.divf %17, %18 : vector<1x4x1xf32>
    %20 = vector.broadcast %8 : vector<1x4x1xf32> to vector<2x4x256xf32>
    %21 = arith.subf %0, %20 : vector<2x4x256xf32>
    %cst_9 = arith.constant 9.99999974E-6 : f32
    %22 = vector.broadcast %cst_9 : f32 to vector<1x4x1xf32>
    %23 = arith.addf %19, %22 : vector<1x4x1xf32>
    %24 = math.rsqrt %23 : vector<1x4x1xf32>
    %25 = vector.broadcast %24 : vector<1x4x1xf32> to vector<2x4x256xf32>
    %26 = arith.mulf %21, %25 : vector<2x4x256xf32>
    %c0_10 = arith.constant 0 : index
    %c0_11 = arith.constant 0 : index
    %c0_12 = arith.constant 0 : index
    %27 = vector.load %arg1[%c0_10, %c0_11, %c0_12] : memref<1x4x1xf32, #tpu.memory_space<vmem>>, vector<1x4x1xf32>
    %28 = vector.broadcast %27 : vector<1x4x1xf32> to vector<2x4x256xf32>
    %29 = arith.mulf %26, %28 : vector<2x4x256xf32>
    %c0_13 = arith.constant 0 : index
    %c0_14 = arith.constant 0 : index
    %c0_15 = arith.constant 0 : index
    %30 = vector.load %arg2[%c0_13, %c0_14, %c0_15] : memref<1x4x1xf32, #tpu.memory_space<vmem>>, vector<1x4x1xf32>
    %31 = vector.broadcast %30 : vector<1x4x1xf32> to vector<2x4x256xf32>
    %32 = arith.addf %29, %31 : vector<2x4x256xf32>
    %33 = math.absf %32 : vector<2x4x256xf32>
    %cst_16 = arith.constant dense<0xFF800000> : vector<2x4xf32>
    %34 = vector.multi_reduction <maximumf>, %33, %cst_16 [2] : vector<2x4x256xf32> to vector<2x4xf32>
    %35 = vector.shape_cast %34 : vector<2x4xf32> to vector<2x4x1xf32>
    %cst_17 = arith.constant dense<0xFF800000> : vector<4x1xf32>
    %36 = vector.multi_reduction <maximumf>, %35, %cst_17 [0] : vector<2x4x1xf32> to vector<4x1xf32>
    %37 = vector.shape_cast %36 : vector<4x1xf32> to vector<1x4x1xf32>
    %cst_18 = arith.constant dense<0xFF800000> : vector<1x1xf32>
    %38 = vector.multi_reduction <maximumf>, %37, %cst_18 [1] : vector<1x4x1xf32> to vector<1x1xf32>
    %39 = vector.shape_cast %38 : vector<1x1xf32> to vector<1x1x1xf32>
    %cst_19 = arith.constant 7.000000e+00 : f32
    %40 = vector.broadcast %cst_19 : f32 to vector<1x1x1xf32>
    %41 = arith.divf %39, %40 : vector<1x1x1xf32>
    %cst_20 = arith.constant 7.000000e+00 : f32
    %42 = vector.broadcast %cst_20 : f32 to vector<1x1x1xf32>
    %43 = arith.mulf %42, %41 : vector<1x1x1xf32>
    %cst_21 = arith.constant 0.000000e+00 : f32
    %44 = vector.broadcast %cst_21 : f32 to vector<1x1x1xf32>
    %45 = arith.subf %44, %43 : vector<1x1x1xf32>
    %46 = vector.broadcast %45 : vector<1x1x1xf32> to vector<2x4x256xf32>
    %47 = arith.maximumf %46, %32 : vector<2x4x256xf32>
    %48 = vector.broadcast %43 : vector<1x1x1xf32> to vector<2x4x256xf32>
    %49 = arith.minimumf %48, %47 : vector<2x4x256xf32>
    %50 = vector.broadcast %41 : vector<1x1x1xf32> to vector<2x4x256xf32>
    %51 = arith.divf %49, %50 : vector<2x4x256xf32>
    %52 = math.roundeven %51 : vector<2x4x256xf32>
    %53 = vector.broadcast %41 : vector<1x1x1xf32> to vector<2x4x256xf32>
    %54 = arith.mulf %52, %53 : vector<2x4x256xf32>
    %c0_22 = arith.constant 0 : index
    %c0_23 = arith.constant 0 : index
    %c0_24 = arith.constant 0 : index
    %55 = vector.load %arg3[%c0_22, %c0_23, %c0_24] : memref<2x4x256xf32, #tpu.memory_space<vmem>>, vector<2x4x256xf32>
    tpu.vector_store %arg3[%c0_22, %c0_23, %c0_24], %54 {strides = array<i32>} : memref<2x4x256xf32, #tpu.memory_space<vmem>>, vector<2x4x256xf32>,
    %56 = vector.shape_cast %41 : vector<1x1x1xf32> to vector<1x1xf32>
    %c0_25 = arith.constant 0 : index
    %c0_26 = arith.constant 0 : index
    %57 = vector.load %arg4[%c0_25, %c0_26] : memref<1x1xf32, #tpu.memory_space<vmem>>, vector<1x1xf32>
    tpu.vector_store %arg4[%c0_25, %c0_26], %56 {strides = array<i32>} : memref<1x1xf32, #tpu.memory_space<vmem>>, vector<1x1xf32>,
    return
  }
}

</mosaic_0001>

<bundles_post_ra>
// kernel: tpu_custom_call.1
= control target key start
LH: loop header
LB: loop body
LE: loop exit
PB: predicated region body
PF: predicated region fallthrough
CT: control target
= control target key end

     0   :  { %10 = vsyncpa [#allocation3], 0  ;;  %s461_s0 = inlined_call_operand.hbm [shape: f32[2,4,256], index: 0, kind: input, shape index: {}]   ;;  %s462_s1 = inlined_call_operand.vmem [shape: f32[1,4,1], index: 1, kind: input, shape index: {}]   ;;  %s463_s2 = inlined_call_operand.vmem [shape: f32[1,4,1], index: 2, kind: input, shape index: {}]   ;;  %s464_s3 = inlined_call_operand.hbm [shape: f32[2,4,256], index: 3, kind: output, shape index: {0}]   ;;  %s465_s4 = inlined_call_operand.hbm [shape: f32[1,1], index: 4, kind: output, shape index: {1}]  }
   0x1   :  { %11 = vsyncpa [#allocation4], 0 }
   0x2   :  { %12 = vsyncpa [#allocation7], 0  ;;  %s17_s17 = sshll.u32 %s461_s0, 4  ;;  %s386_s18 = smov [#allocation2]   ;;  %s18_s17 = int_to_ptr.hbm [resolvable:$true] %s17_s17 }
   0x3   :  { %s19_s19 = sshll.u32 %s386_s18, 4  ;;  %s387_s20 = smov 128   ;;  %s20_s19 = int_to_ptr.vmem [resolvable:$true] %s19_s19 }
   0x4   :  { %s388_s21 = smov 8  }
   0x5   :  { %25 = dma.hbm_to_vmem [thread:$0]  %s18_s17, 256, %s20_s19, [#allocation3], %s387_s20, %s387_s20, %s388_s21  }
   0x6   :  { %380 = dma.done.wait [#allocation3], 256  }
   0x7   :  { %381 = vsyncadd [#allocation3], 4294967040  ;;  %v34_v0 = vld [vmem:[#allocation2] sm:$0xff]  ;;  %v35_v1 = vld [vmem:[#allocation2 + $0x8] sm:$0xff]  ;;  %vm49_vm0 = vcmask 1043456   ;;  %v389_v12 = vmov 256.0  }
   0x8   :  { %38 = vst [vmem:[#allocation1] ss:$2 sm:$0xff] %v34_v0  ;;  %298 = vrcp.f32 %v389_v12  ;;  %v390_v14 = vmov 2.0   ;;  %v391_v27 = vmov 839922192   ;;  %v392_v32 = vmov 0  }
   0x9   :  { %42 = vst [vmem:[#allocation1 + $0x10] ss:$2 sm:$0xff] %v35_v1  ;;  %300 = vrcp.f32 %v390_v14  ;;  %v82_v28 = vunpack.c.l.s4 %v391_v27  ;;  %v138_v31 = vld [vmem:[%s462_s1] sm:$0xf]  ;;  %296 = vset.pattern.permute.xlu2 %v392_v32  ;;  %297 = vset.pattern.permute.xlu0 %v392_v32  ;;  %s394_s1 = smov [#allocation6]   ;;  %s255_s27 = sshll.u32 %s465_s4, 4  ;;  %s256_s27 = int_to_ptr.hbm [resolvable:$true] %s255_s27 }
   0xa   :  { %141 = vperm.xlu2 %296, %v138_v31   ;;  %v150_v40 = vld [vmem:[%s463_s2] sm:$0xf]  ;;  %s253_s2 = sshll.u32 %s394_s1, 4  ;;  %vm233_vm7 = vcmask 0   ;;  %s395_s4 = smov [#allocation5]   ;;  %s254_s2 = int_to_ptr.vmem [resolvable:$true] %s253_s2 }
   0xb   :  { %v83_v36 = vunpack.c.0.s8 %v82_v28  ;;  %s239_s28 = sshll.u32 %s395_s4, 4  ;;  %s241_s5 = sshll.u32 %s464_s3, 4  ;;  %s240_s28 = int_to_ptr.vmem [resolvable:$true] %s239_s28  ;;  %s242_s5 = int_to_ptr.hbm [resolvable:$true] %s241_s5 }
   0xe   :  { %v299_v13 = vpop.eup %298 }
   0xf   :  { %v39_v2 = vld.sshfl [vmem:[#allocation1] sm:$0xff pattern:$0x75316420]  ;;  %v40_v3 = vld.sshfl [vmem:[#allocation1 + $0x8] sm:$0xff pattern:$0x75316420]  ;;  %v301_v16 = vpop.eup %300  ;;  %vm65_vm1 = vweird.f32 %v299_v13 }
  0x10   :  { %v50_v4 = vsel %vm49_vm0, %v39_v2, 0.0  ;;  %v51_v5 = vsel %vm49_vm0, %v40_v3, 0.0  ;;  %v43_v7 = vld.sshfl [vmem:[#allocation1 + $0x10] sm:$0xff pattern:$0x75316420]  ;;  %v61_v15 = vmul.f32 256.0, %v299_v13  ;;  %vm77_vm2 = vweird.f32 %v301_v16 }
  0x11   :  { %v52_v6 = vadd.f32 %v51_v5, %v50_v4  ;;  %v44_v8 = vld.sshfl [vmem:[#allocation1 + $0x18] sm:$0xff pattern:$0x75316420]  ;;  %v55_v9 = vsel %vm49_vm0, %v43_v7, 0.0  ;;  %v73_v18 = vmul.f32 2.0, %v301_v16 }
  0x12   :  { %v56_v10 = vsel %vm49_vm0, %v44_v8, 0.0  ;;  %v62_v17 = vsub.f32 1.0, %v61_v15  ;;  %153 = vperm.xlu2 %296, %v150_v40  }
  0x13   :  { %53 = vadd.xlane.f32.xlu0 %v52_v6  ;;  %v57_v11 = vadd.f32 %v56_v10, %v55_v9  ;;  %v74_v20 = vsub.f32 1.0, %v73_v18 }
  0x14   :  { %v63_v19 = vmul.f32 %v299_v13, %v62_v17 }
  0x15   :  { %v75_v23 = vmul.f32 %v301_v16, %v74_v20 }
  0x16   :  { %v64_v21 = vadd.f32 %v299_v13, %v63_v19 }
  0x17   :  { %v76_v26 = vadd.f32 %v301_v16, %v75_v23 }
  0x18   :  { %v66_v24 = vsel %vm65_vm1, %v299_v13, %v64_v21 }
  0x19   :  { %v78_v34 = vsel %vm77_vm2, %v301_v16, %v76_v26 }
  0x1b   :  { %58 = vadd.xlane.f32.xlu0 %v57_v11 }
  0x64   :  { %v142_v3 = vpop.permute.xlu2 %141 }
  0x65   :  { %v146_v12 = vperm.slane %v142_v3, %v83_v36 }
  0x6c   :  { %v154_v9 = vpop.permute.xlu2 %153 }
  0x6d   :  { %v158_v15 = vperm.slane %v154_v9, %v83_v36 }
  0x86   :  { %v54_v22 = vpop.xlane.xlu0 %53 }
  0x87   :  { %v67_v25 = vmul.f32 %v66_v24, %v54_v22 }
  0x89   :  { %v69_v33 = vsel %vm49_vm0, %v67_v25, 0.0 }
  0x8e   :  { %v59_v29 = vpop.xlane.xlu0 %58 }
  0x8f   :  { %v68_v30 = vmul.f32 %v66_v24, %v59_v29 }
  0x91   :  { %v70_v35 = vsel %vm49_vm0, %v68_v30, 0.0  ;;  %v393_v30 = vmov 7.0  }
  0x92   :  { %v71_v37 = vadd.f32 %v70_v35, %v69_v33 }
  0x94   :  { %v79_v38 = vmul.f32 %v78_v34, %v71_v37 }
  0x96   :  { %v84_v39 = vperm.slane %v79_v38, %v83_v36 }
  0x98   :  { %v86_v41 = vsub.f32 %v34_v0, %v84_v39  ;;  %v87_v42 = vsub.f32 %v35_v1, %v84_v39 }
  0x9a   :  { %v88_v43 = vmul.f32 %v86_v41, %v86_v41  ;;  %v89_v44 = vmul.f32 %v87_v42, %v87_v42 }
  0x9c   :  { %92 = vst [vmem:[#allocation1] ss:$2 sm:$0xff] %v88_v43 }
  0x9d   :  { %96 = vst [vmem:[#allocation1 + $0x10] ss:$2 sm:$0xff] %v89_v44 }
  0xa3   :  { %v93_v45 = vld.sshfl [vmem:[#allocation1] sm:$0xff pattern:$0x75316420]  ;;  %v94_v46 = vld.sshfl [vmem:[#allocation1 + $0x8] sm:$0xff pattern:$0x75316420] }
  0xa4   :  { %v103_v47 = vsel %vm49_vm0, %v93_v45, 0.0  ;;  %v104_v48 = vsel %vm49_vm0, %v94_v46, 0.0  ;;  %v97_v50 = vld.sshfl [vmem:[#allocation1 + $0x10] sm:$0xff pattern:$0x75316420] }
  0xa5   :  { %v105_v49 = vadd.f32 %v104_v48, %v103_v47  ;;  %v98_v51 = vld.sshfl [vmem:[#allocation1 + $0x18] sm:$0xff pattern:$0x75316420]  ;;  %v108_v52 = vsel %vm49_vm0, %v97_v50, 0.0 }
  0xa6   :  { %v109_v53 = vsel %vm49_vm0, %v98_v51, 0.0 }
  0xa7   :  { %106 = vadd.xlane.f32.xlu1 %v105_v49  ;;  %v110_v54 = vadd.f32 %v109_v53, %v108_v52 }
  0xaf   :  { %111 = vadd.xlane.f32.xlu1 %v110_v54 }
 0x11a   :  { %v107_v55 = vpop.xlane.xlu1 %106 }
 0x11b   :  { %v113_v56 = vmul.f32 %v107_v55, %v66_v24 }
 0x11d   :  { %v115_v59 = vsel %vm49_vm0, %v113_v56, 0.0 }
 0x122   :  { %v112_v57 = vpop.xlane.xlu1 %111 }
 0x123   :  { %v114_v58 = vmul.f32 %v112_v57, %v66_v24 }
 0x125   :  { %v116_v60 = vsel %vm49_vm0, %v114_v58, 0.0 }
 0x126   :  { %v117_v61 = vadd.f32 %v116_v60, %v115_v59 }
 0x128   :  { %v118_v62 = vmul.f32 %v117_v61, %v78_v34 }
 0x12a   :  { %v119_v63 = vadd.f32 1e-05, %v118_v62 }
 0x12c   :  { %302 = vrsqrt.f32 %v119_v63  ;;  %vm126_vm4 = vweird.f32 %v119_v63 }
 0x12d   :  { %304 = vrcp.f32 %v393_v30 }
 0x132   :  { %v303_v0 = vpop.eup %302 }
 0x133   :  { %v121_v1 = vmul.f32 %v303_v0, %v119_v63  ;;  %vm127_vm3 = vweird.f32 %v303_v0  ;;  %v305_v31 = vpop.eup %304 }
 0x134   :  { %vm128_vm5 = vmor %vm126_vm4, %vm127_vm3  ;;  %v198_v32 = vmul.f32 7.0, %v305_v31  ;;  %vm202_vm6 = vweird.f32 %v305_v31 }
 0x135   :  { %v122_v2 = vmul.f32 %v303_v0, %v121_v1 }
 0x136   :  { %v199_v37 = vsub.f32 1.0, %v198_v32 }
 0x137   :  { %v123_v4 = vmul.f32 0.5, %v122_v2 }
 0x139   :  { %v124_v5 = vsub.f32 1.5, %v123_v4 }
 0x13b   :  { %v125_v6 = vmul.f32 %v303_v0, %v124_v5 }
 0x13d   :  { %v129_v7 = vsel %vm128_vm5, %v303_v0, %v125_v6 }
 0x13e   :  { %v134_v8 = vperm.slane %v129_v7, %v83_v36 }
 0x140   :  { %v136_v10 = vmul.f32 %v134_v8, %v86_v41  ;;  %v137_v11 = vmul.f32 %v134_v8, %v87_v42  ;;  %v200_v41 = vmul.f32 %v305_v31, %v199_v37 }
 0x142   :  { %v148_v13 = vmul.f32 %v146_v12, %v136_v10  ;;  %v149_v14 = vmul.f32 %v146_v12, %v137_v11  ;;  %v201_v44 = vadd.f32 %v305_v31, %v200_v41 }
 0x144   :  { %v160_v16 = vadd.f32 %v158_v15, %v148_v13  ;;  %v161_v17 = vadd.f32 %v158_v15, %v149_v14  ;;  %v203_v47 = vsel %vm202_vm6, %v305_v31, %v201_v44 }
 0x146   :  { %v162_v18 = vand.u32 2147483647, %v160_v16  ;;  %v163_v19 = vand.u32 2147483647, %v161_v17 }
 0x148   :  { %166 = vst [vmem:[#allocation1] ss:$2 sm:$0xff] %v162_v18 }
 0x149   :  { %170 = vst [vmem:[#allocation1 + $0x10] ss:$2 sm:$0xff] %v163_v19 }
 0x14f   :  { %v167_v20 = vld.sshfl [vmem:[#allocation1] sm:$0xff pattern:$0x75316420]  ;;  %v168_v21 = vld.sshfl [vmem:[#allocation1 + $0x8] sm:$0xff pattern:$0x75316420] }
 0x150   :  { %v171_v22 = vld.sshfl [vmem:[#allocation1 + $0x10] sm:$0xff pattern:$0x75316420]  ;;  %v172_v23 = vld.sshfl [vmem:[#allocation1 + $0x18] sm:$0xff pattern:$0x75316420] }
 0x151   :  { %v182_v24 = vsel %vm49_vm0, %v171_v22, -inf  ;;  %v183_v25 = vsel %vm49_vm0, %v172_v23, -inf  ;;  %v177_v26 = vsel %vm49_vm0, %v167_v20, -inf  ;;  %v178_v27 = vsel %vm49_vm0, %v168_v21, -inf }
 0x152   :  { %v184_v28 = vmax.f32 %v182_v24, %v183_v25  ;;  %v179_v29 = vmax.f32 %v177_v26, %v178_v27 }
 0x154   :  { %185 = vmax.xlane.f32.xlu1 %v184_v28  ;;  %180 = vmax.xlane.f32.xlu0 %v179_v29 }
 0x1c7   :  { %v186_v33 = vpop.xlane.xlu1 %185  ;;  %v181_v34 = vpop.xlane.xlu0 %180 }
 0x1c8   :  { %v188_v35 = vsel %vm49_vm0, %v186_v33, -inf  ;;  %v187_v36 = vsel %vm49_vm0, %v181_v34, -inf }
 0x1c9   :  { %v189_v38 = vmax.f32 %v187_v36, %v188_v35 }
 0x1cb   :  { %v190_v39 = vsel %vm49_vm0, %v189_v38, -inf }
 0x1cc   :  { %v191_v40 = vrot.slane %v190_v39, 4 }
 0x1ce   :  { %v192_v42 = vmax.f32 %v190_v39, %v191_v40 }
 0x1d0   :  { %v193_v43 = vrot.slane %v192_v42, 2 }
 0x1d2   :  { %v194_v45 = vmax.f32 %v192_v42, %v193_v43 }
 0x1d4   :  { %v195_v46 = vrot.slane %v194_v45, 1 }
 0x1d6   :  { %v196_v48 = vmax.f32 %v194_v45, %v195_v46 }
 0x1d8   :  { %v204_v49 = vmul.f32 %v203_v47, %v196_v48 }
 0x1da   :  { %306 = vrcp.f32 %v204_v49  ;;  %234 = vst.msk [vmem:[#allocation6] sm:$0x1] %vm233_vm7, %v204_v49  ;;  %v205_v50 = vmul.f32 7.0, %v204_v49  ;;  %v220_v55 = vand.u32 2147483647, %v204_v49  ;;  %v222_v56 = vand.u32 2147483648, %v204_v49 }
 0x1db   :  { %258 = dma.vmem_to_hbm [thread:$0]  %s254_s2, 16, %s256_s27, [#allocation7]   ;;  %vm216_vm9 = vweird.f32 %v204_v49 }
 0x1dc   :  { %v206_v52 = vsub.f32 0.0, %v205_v50  ;;  %v223_v61 = vor.u32 1.1754944e-38, %v222_v56  ;;  %vm221_vm11 = vcmp.eq.f32.partialorder %v220_v55, 8.507059e+37 }
 0x1de   :  { %v207_v57 = vmax.f32 %v206_v52, %v160_v16  ;;  %v208_v58 = vmax.f32 %v206_v52, %v161_v17 }
 0x1e0   :  { %v307_v51 = vpop.eup %306  ;;  %v209_v62 = vmin.f32 %v205_v50, %v207_v57  ;;  %v210_v63 = vmin.f32 %v205_v50, %v208_v58 }
 0x1e1   :  { %v212_v53 = vmul.f32 %v307_v51, %v204_v49  ;;  %vm217_vm8 = vweird.f32 %v307_v51 }
 0x1e2   :  { %vm218_vm10 = vmor %vm216_vm9, %vm217_vm8 }
 0x1e3   :  { %v213_v54 = vsub.f32 1.0, %v212_v53 }
 0x1e5   :  { %v214_v59 = vmul.f32 %v307_v51, %v213_v54 }
 0x1e7   :  { %v215_v60 = vadd.f32 %v307_v51, %v214_v59 }
 0x1e9   :  { %v219_v0 = vsel %vm218_vm10, %v307_v51, %v215_v60 }
 0x1ea   :  { %v224_v1 = vsel %vm221_vm11, %v223_v61, %v219_v0 }
 0x1eb   :  { %v225_v2 = vmul.f32 %v224_v1, %v209_v62  ;;  %v226_v3 = vmul.f32 %v224_v1, %v210_v63 }
 0x1ed   :  { %v272_v4 = vcvt.f32.s32 %v225_v2  ;;  %v280_v5 = vcvt.f32.s32 %v226_v3  ;;  %v270_v7 = vand.u32 2147483647, %v225_v2  ;;  %v275_v10 = vand.u32 2147483648, %v225_v2 }
 0x1ee   :  { %v278_v11 = vand.u32 2147483647, %v226_v3  ;;  %v283_v13 = vand.u32 2147483648, %v226_v3 }
 0x1ef   :  { %v273_v6 = vcvt.s32.f32 %v272_v4  ;;  %v281_v8 = vcvt.s32.f32 %v280_v5  ;;  %vm271_vm12 = vcmp.lt.f32.partialorder %v270_v7, 8388608.0 }
 0x1f0   :  { %vm279_vm13 = vcmp.lt.f32.partialorder %v278_v11, 8388608.0 }
 0x1f1   :  { %v274_v9 = vand.u32 2147483647, %v273_v6  ;;  %v282_v12 = vand.u32 2147483647, %v281_v8 }
 0x1f3   :  { %v276_v14 = vor.u32 %v275_v10, %v274_v9  ;;  %v284_v15 = vor.u32 %v283_v13, %v282_v12 }
 0x1f5   :  { %v277_v16 = vsel %vm271_vm12, %v276_v14, %v225_v2  ;;  %v285_v17 = vsel %vm279_vm13, %v284_v15, %v226_v3 }
 0x1f6   :  { %v229_v18 = vmul.f32 %v277_v16, %v204_v49  ;;  %v230_v19 = vmul.f32 %v285_v17, %v204_v49 }
 0x1f8   :  { %231 = vst [vmem:[#allocation5] sm:$0xff] %v229_v18 }
 0x1f9   :  { %232 = vst [vmem:[#allocation5 + $0x8] sm:$0xff] %v230_v19 }
 0x1fa   :  { %247 = dma.vmem_to_hbm [thread:$0]  %s240_s28, 256, %s242_s5, [#allocation4], %s387_s20, %s387_s20, %s388_s21  }
 0x1fb   :  { %382 = dma.done.wait [#allocation4], 256  }
 0x1fc   :  { %383 = vsyncadd [#allocation4], 4294967040 }
 0x1fd   :  { %384 = dma.done.wait [#allocation7], 16  }
 0x1fe   :  { %385 = vsyncadd [#allocation7], 4294967280 }
 0x1ff   :  { %267 = vsyncpa [#allocation3], 1 }
 0x200   :  { %268 = vsyncpa [#allocation4], 1 }
 0x201   :  { %269 = vsyncpa [#allocation7], 1 }

</bundles_post_ra>
